<compile_context>
chip_gen: v6e
topology: v6e:2x2x1
jax: 0.10.0
libtpu: 0.0.40
codegen_flags: <defaults>
</compile_context>

<pallas_src>
import functools

import jax
import jax.numpy as jnp
from jax import lax
from jax.experimental import pallas as pl
from jax.experimental.pallas import tpu as pltpu

EPS = 1e-6


# ----------------------------------------------------------------------------- helpers
def _ceil_to(v, m):
    return -(-v // m) * m


def _pick_row_block(n):
    """Positive-row block size: must divide N and be 128-aligned (or be all of N)."""
    if n % 128 != 0 or n <= 128:
        # TODO(synk): pad N to the next 128 multiple + mask padded anchors/positives so
        #             ragged batches still split across v7x cores; single block for now.
        return n
    half = n // 2
    if half % 128 == 0 and half <= 1024:
        return half                      # g == 2: minimal steps, one block per v7x core
    for tn in (1024, 512, 256, 128):
        if n % tn == 0:
            return tn
    return n


def _vmem_estimate(n, m, d, tn, in_dtype, mm_dtype):
    in_b = jnp.dtype(in_dtype).itemsize
    mm_b = jnp.dtype(mm_dtype).itemsize
    dp = _ceil_to(d, 128)
    n8 = _ceil_to(n, 8)
    tl = _ceil_to(tn, 128)
    if d % 128 == 0:
        x_bytes = n8 * _ceil_to(m * d, 128) * in_b        # flat (N, M*D) resident buffer
    else:
        x_bytes = n8 * _ceil_to(m, 8) * dp * in_b         # 3-D block, (M, D) tile padding
    return (2 * x_bytes                 # resident x (double-buffered by default)
            + 3 * n8 * dp * 4           # f32 anchor sum / b / chunk temp
            + (n8 + tn) * dp * mm_b     # MXU operands
            + 4 * n8 * tl * 4           # logits-sized f32/bool temps
            + 4 * 8 * tl * 4)           # (1, tn) output rows


def _vmem_limit(est_bytes):
    # Honest request (~1.5x footprint), small floor for compiler-internal scratch,
    # capped well under v7x's 64 MiB/TC physical VMEM.
    return int(min(56 * 2**20, max(8 * 2**20, (3 * est_bytes) // 2)))


# ----------------------------------------------------------------------------- kernel
def _proto_kernel(x_ref, loss_ref, corr_ref, *, n, m, d, tn, flat, mm_dtype):
    """One fused step per row-block of positives (CE row losses + top-1 correctness)."""
    i = pl.program_id(0)
    row0 = pl.multiple_of(i * tn, tn)

    # ---- anchors b = mean(x[:,1:,:]) - eps over ALL N rows (recomputed per step so the
    # ---- grid stays embarrassingly parallel), plus the positives of this row block.
    if flat:                                      # x_ref is (N, M*D), D % 128 == 0
        def chunk(k):
            return x_ref[:, k * d:(k + 1) * d].astype(jnp.float32)
        total = chunk(1)
        for k in range(2, m):                     # unrolled lane-aligned D-wide slices
            total = total + chunk(k)
        pos = x_ref[pl.ds(row0, tn), 0:d].astype(jnp.float32)            # (tn, D)
    else:                                         # ragged D: keep the (N, M, D) block
        x3 = x_ref[...]
        total = x3[:, 1, :].astype(jnp.float32)
        for k in range(2, m):
            total = total + x3[:, k, :].astype(jnp.float32)
        pos = x_ref[pl.ds(row0, tn), :, :][:, 0, :].astype(jnp.float32)  # (tn, D)

    b = total * (1.0 / (m - 1)) - EPS                      # (N, D)  mean(x[:,1:,:]) - eps
    sqb = jnp.sum(b * b, axis=1, keepdims=True)            # (N, 1)  f32
    b_mm = b.astype(mm_dtype)
    pos_mm = (2.0 * pos).astype(mm_dtype)                  # fold Gram 2x into small operand

    # crossT[j, r] = b_j . (2*pos_{row0+r}) : NT-form contraction -> one MXU matmul with
    # f32 accumulation (same pattern as q.k^T in flash attention, no materialized transpose).
    crossT = lax.dot_general(b_mm, pos_mm, (((1,), (1,)), ((), ())),
                             preferred_element_type=jnp.float32)         # (N, tn)
    # logitsT = original logits + ||pos_r||^2 (per-positive constant: CE & argmax invariant).
    logitsT = crossT - sqb                                               # (N, tn)

    # Softmax cross-entropy over anchors (axis 0) per positive column; `shifted` is reused
    # for exp, diagonal extraction and the top-1 max test.
    col_max = jnp.max(logitsT, axis=0, keepdims=True)                    # (1, tn)
    shifted = logitsT - col_max                                          # (N, tn), <= 0
    sumexp = jnp.sum(jnp.exp(shifted), axis=0, keepdims=True)            # (1, tn)

    row_iota = lax.broadcasted_iota(jnp.int32, (n, 1), 0)                # (N, 1) anchor j
    col_iota = lax.broadcasted_iota(jnp.int32, (1, tn), 1)               # (1, tn) local r
    labels = i * tn + col_iota                                           # global positive
    diag_mask = row_iota == labels                                       # broadcast compare
    diag_shifted = jnp.sum(jnp.where(diag_mask, shifted, 0.0),
                           axis=0, keepdims=True)                        # (1, tn)
    # loss_r = logsumexp - diag logit; the col_max term cancels between the two.
    loss_ref[...] = jnp.log(sumexp) - diag_shifted

    # Top-1: first anchor index attaining the column max must equal the label.
    amax = jnp.min(jnp.where(shifted >= 0.0, row_iota, n),
                   axis=0, keepdims=True)                                # (1, tn)
    corr_ref[...] = (amax == labels).astype(jnp.float32)


# ----------------------------------------------------------------------------- wrapper
def proto_loss(x, label=None, matmul_dtype=None):
    """Returns (loss, prec1); `label` is ignored exactly like the PyTorch module."""
    N, M, D = x.shape
    if M < 2:
        raise ValueError("ProtoLoss needs at least 2 utterances per speaker (M >= 2); "
                         "M == 1 gives an empty anchor set (NaN in the PyTorch module).")
    if matmul_dtype is None:
        # bf16 embeddings feed the MXU natively; f32 inputs stay f32 so the Gram expansion
        # stays numerically close to the reference distances.
        # TODO(synk): on v6e/v7x a bf16 MXU path for f32 inputs is ~3x faster but suffers
        #             cancellation on the diagonal logits; opt in via matmul_dtype.
        matmul_dtype = jnp.bfloat16 if x.dtype == jnp.bfloat16 else jnp.float32

    tn = _pick_row_block(N)
    g = N // tn
    flat = (D % 128 == 0)

    if flat:
        x_in = x.reshape(N, M * D)                         # free, contiguous reshape
        x_spec = pl.BlockSpec((N, M * D), lambda i: (0, 0))
    else:
        x_in = x
        x_spec = pl.BlockSpec((N, M, D), lambda i: (0, 0, 0))

    kernel = functools.partial(_proto_kernel, n=N, m=M, d=D, tn=tn, flat=flat,
                               mm_dtype=matmul_dtype)
    est = _vmem_estimate(N, M, D, tn, x.dtype, matmul_dtype)

    # TODO(synk): for x too large to sit VMEM-resident a two-pass / anchor-blocked
    #             online-logsumexp variant would be needed; not implemented here.
    loss_rows, corr_rows = pl.pallas_call(
        kernel,
        out_shape=(jax.ShapeDtypeStruct((1, N), jnp.float32),
                   jax.ShapeDtypeStruct((1, N), jnp.float32)),
        grid=(g,),
        in_specs=[x_spec],
        out_specs=(pl.BlockSpec((1, tn), lambda i: (0, i)),
                   pl.BlockSpec((1, tn), lambda i: (0, i))),
        compiler_params=pltpu.CompilerParams(
            dimension_semantics=(pltpu.PARALLEL,),
            vmem_limit_bytes=_vmem_limit(est)),
    )(x_in)

    # Final N -> 1 reduction of per-row losses / correctness (tiny, cold path).
    loss = jnp.sum(loss_rows) / jnp.float32(N)
    prec1 = 100.0 * jnp.sum(corr_rows) / jnp.float32(N)
    return loss, prec1


# ----------------------------------------------------------------------------- reference
def proto_loss_ref(x):
    """Pure-JAX (f32) reference mirroring the PyTorch forward, for sanity checking."""
    xf = x.astype(jnp.float32)
    pos = xf[:, 0, :]
    anc = jnp.mean(xf[:, 1:, :], axis=1)
    output = -jnp.sum((pos[:, None, :] - anc[None, :, :] + EPS) ** 2, axis=-1)
    N = x.shape[0]
    labels = jnp.arange(N)
    lse = jax.nn.logsumexp(output, axis=1)
    loss = jnp.mean(lse - output[labels, labels])
    prec1 = 100.0 * jnp.mean((jnp.argmax(output, axis=1) == labels).astype(jnp.float32))
    return loss, prec1


if __name__ == "__main__":
    # --- test 1: small module-consistent shapes (single row block, 3-D x path) -------
    key = jax.random.PRNGKey(0)
    N, M, D = 8, 4, 32
    x = jax.random.normal(key, (N, M, D), dtype=jnp.float32)
    loss, prec1 = proto_loss(x)
    jax.block_until_ready((loss, prec1))
    ref_loss, ref_prec1 = proto_loss_ref(x)
    assert jnp.allclose(loss, ref_loss, atol=1e-3, rtol=1e-3), (loss, ref_loss)
    assert jnp.allclose(prec1, ref_prec1, atol=1e-3), (prec1, ref_prec1)

    # --- test 2: lane-aligned D (flat path) + multi-block row-parallel grid -----------
    N2, M2, D2 = 256, 3, 128
    x2 = jax.random.normal(jax.random.PRNGKey(1), (N2, M2, D2), dtype=jnp.float32)
    loss2, prec2 = proto_loss(x2)
    jax.block_until_ready((loss2, prec2))
    ref_loss2, ref_prec2 = proto_loss_ref(x2)
    assert jnp.allclose(loss2, ref_loss2, atol=1e-2, rtol=1e-3), (loss2, ref_loss2)
    assert abs(float(prec2) - float(ref_prec2)) <= 0.5, (prec2, ref_prec2)

    # --- test 3: ragged D (3-D path) with a multi-block grid ---------------------------
    N3, M3, D3 = 256, 2, 64
    x3 = jax.random.normal(jax.random.PRNGKey(2), (N3, M3, D3), dtype=jnp.float32)
    loss3, prec3 = proto_loss(x3)
    jax.block_until_ready((loss3, prec3))
    ref_loss3, ref_prec3 = proto_loss_ref(x3)
    assert jnp.allclose(loss3, ref_loss3, atol=1e-2, rtol=1e-3), (loss3, ref_loss3)
    assert abs(float(prec3) - float(ref_prec3)) <= 0.5, (prec3, ref_prec3)

    # --- test 4: bf16 embeddings -> bf16 MXU operands (v6e / v7x fast path) ------------
    xb = x.astype(jnp.bfloat16)
    loss_b, prec_b = proto_loss(xb)
    jax.block_until_ready((loss_b, prec_b))
    ref_loss_b, _ = proto_loss_ref(xb)
    assert bool(jnp.isfinite(loss_b)), loss_b
    assert abs(float(loss_b) - float(ref_loss_b)) < 1.0, (loss_b, ref_loss_b)
    assert 0.0 <= float(prec_b) <= 100.0, prec_b

    print("KERNEL_OK")
</pallas_src>

<mosaic_0001>
module attributes {stable_mosaic.version = 11 : i64} {
  func.func @_proto_kernel(%arg0: i32, %arg1: memref<8x4x32xf32, #tpu.memory_space<vmem>>, %arg2: memref<1x8xf32, #tpu.memory_space<vmem>>, %arg3: memref<1x8xf32, #tpu.memory_space<vmem>>) attributes {dimension_semantics = [#tpu.dimension_semantics<parallel>], iteration_bounds = array<i64: 1>, scalar_prefetch = 0 : i64, scratch_operands = 0 : i64, tpu.core_type = #tpu.core_type<tc>, window_params = [{pipeline_mode = #tpu.pipeline_mode<synchronous>, transform_indices = @transform_0, window_bounds = array<i64: 8, 4, 32>}, {transform_indices = @transform_1, window_bounds = array<i64: 1, 8>}, {transform_indices = @transform_2, window_bounds = array<i64: 1, 8>}]} {
    %c8_i32 = arith.constant 8 : i32
    %0 = arith.muli %arg0, %c8_i32 : i32
    %1 = tpu.assume_multiple %0, 8 : i32
    %c0 = arith.constant 0 : index
    %c0_0 = arith.constant 0 : index
    %c0_1 = arith.constant 0 : index
    %2 = vector.load %arg1[%c0, %c0_0, %c0_1] : memref<8x4x32xf32, #tpu.memory_space<vmem>>, vector<8x4x32xf32>
    %3 = vector.extract_strided_slice %2 {offsets = [0, 1, 0], sizes = [8, 1, 32], strides = [1, 1, 1]} : vector<8x4x32xf32> to vector<8x1x32xf32>
    %4 = vector.shape_cast %3 : vector<8x1x32xf32> to vector<8x32xf32>
    %5 = vector.extract_strided_slice %2 {offsets = [0, 2, 0], sizes = [8, 1, 32], strides = [1, 1, 1]} : vector<8x4x32xf32> to vector<8x1x32xf32>
    %6 = vector.shape_cast %5 : vector<8x1x32xf32> to vector<8x32xf32>
    %7 = arith.addf %4, %6 : vector<8x32xf32>
    %8 = vector.extract_strided_slice %2 {offsets = [0, 3, 0], sizes = [8, 1, 32], strides = [1, 1, 1]} : vector<8x4x32xf32> to vector<8x1x32xf32>
    %9 = vector.shape_cast %8 : vector<8x1x32xf32> to vector<8x32xf32>
    %10 = arith.addf %7, %9 : vector<8x32xf32>
    %11 = arith.index_cast %1 : i32 to index
    %c0_2 = arith.constant 0 : index
    %c0_3 = arith.constant 0 : index
    %12 = vector.load %arg1[%11, %c0_2, %c0_3] : memref<8x4x32xf32, #tpu.memory_space<vmem>>, vector<8x4x32xf32>
    %13 = vector.extract_strided_slice %12 {offsets = [0, 0, 0], sizes = [8, 1, 32], strides = [1, 1, 1]} : vector<8x4x32xf32> to vector<8x1x32xf32>
    %14 = vector.shape_cast %13 : vector<8x1x32xf32> to vector<8x32xf32>
    %cst = arith.constant 0.333333343 : f32
    %15 = vector.broadcast %cst : f32 to vector<8x32xf32>
    %16 = arith.mulf %10, %15 : vector<8x32xf32>
    %cst_4 = arith.constant 9.99999997E-7 : f32
    %17 = vector.broadcast %cst_4 : f32 to vector<8x32xf32>
    %18 = arith.subf %16, %17 : vector<8x32xf32>
    %19 = arith.mulf %18, %18 : vector<8x32xf32>
    %cst_5 = arith.constant dense<0.000000e+00> : vector<8xf32>
    %20 = vector.multi_reduction <add>, %19, %cst_5 [1] : vector<8x32xf32> to vector<8xf32>
    %21 = vector.shape_cast %20 : vector<8xf32> to vector<8x1xf32>
    %cst_6 = arith.constant 2.000000e+00 : f32
    %22 = vector.broadcast %cst_6 : f32 to vector<8x32xf32>
    %23 = arith.mulf %22, %14 : vector<8x32xf32>
    %cst_7 = arith.constant dense<0.000000e+00> : vector<8x8xf32>
    %24 = tpu.matmul %18, %23, %cst_7 {dimension_numbers = #tpu.dot_dimension_numbers<[1], [1], [0], [0], [0, 0, 1, 0], [], []>} : vector<8x32xf32>, vector<8x32xf32>, vector<8x8xf32> -> vector<8x8xf32>
    %25 = vector.broadcast %21 : vector<8x1xf32> to vector<8x8xf32>
    %26 = arith.subf %24, %25 : vector<8x8xf32>
    %cst_8 = arith.constant dense<0xFF800000> : vector<8xf32>
    %27 = vector.multi_reduction <maximumf>, %26, %cst_8 [0] : vector<8x8xf32> to vector<8xf32>
    %28 = vector.shape_cast %27 : vector<8xf32> to vector<1x8xf32>
    %29 = vector.broadcast %28 : vector<1x8xf32> to vector<8x8xf32>
    %30 = arith.subf %26, %29 : vector<8x8xf32>
    %31 = math.exp %30 : vector<8x8xf32>
    %cst_9 = arith.constant dense<0.000000e+00> : vector<8xf32>
    %32 = vector.multi_reduction <add>, %31, %cst_9 [0] : vector<8x8xf32> to vector<8xf32>
    %33 = vector.shape_cast %32 : vector<8xf32> to vector<1x8xf32>
    %34 = tpu.iota {dimensions = array<i32: 0>} : vector<8x1xi32>
    %35 = tpu.iota {dimensions = array<i32: 1>} : vector<1x8xi32>
    %c8_i32_10 = arith.constant 8 : i32
    %36 = arith.muli %arg0, %c8_i32_10 : i32
    %37 = vector.broadcast %36 : i32 to vector<1x8xi32>
    %38 = arith.addi %37, %35 : vector<1x8xi32>
    %39 = vector.broadcast %34 : vector<8x1xi32> to vector<8x8xi32>
    %40 = vector.broadcast %38 : vector<1x8xi32> to vector<8x8xi32>
    %41 = arith.cmpi eq, %39, %40 : vector<8x8xi32>
    %cst_11 = arith.constant 0.000000e+00 : f32
    %42 = vector.broadcast %cst_11 : f32 to vector<8x8xf32>
    %43 = arith.select %41, %30, %42 : vector<8x8xi1>, vector<8x8xf32>
    %cst_12 = arith.constant dense<0.000000e+00> : vector<8xf32>
    %44 = vector.multi_reduction <add>, %43, %cst_12 [0] : vector<8x8xf32> to vector<8xf32>
    %45 = vector.shape_cast %44 : vector<8xf32> to vector<1x8xf32>
    %46 = math.log %33 : vector<1x8xf32>
    %47 = arith.subf %46, %45 : vector<1x8xf32>
    %c0_13 = arith.constant 0 : index
    %c0_14 = arith.constant 0 : index
    %48 = vector.load %arg2[%c0_13, %c0_14] : memref<1x8xf32, #tpu.memory_space<vmem>>, vector<1x8xf32>
    tpu.vector_store %arg2[%c0_13, %c0_14], %47 {strides = array<i32>} : memref<1x8xf32, #tpu.memory_space<vmem>>, vector<1x8xf32>,
    %cst_15 = arith.constant 0.000000e+00 : f32
    %49 = vector.broadcast %cst_15 : f32 to vector<8x8xf32>
    %50 = arith.cmpf oge, %30, %49 : vector<8x8xf32>
    %c8_i32_16 = arith.constant 8 : i32
    %51 = vector.shape_cast %34 : vector<8x1xi32> to vector<8x1xi32>
    %52 = vector.broadcast %51 : vector<8x1xi32> to vector<8x8xi32>
    %53 = vector.broadcast %c8_i32_16 : i32 to vector<8x8xi32>
    %54 = arith.select %50, %52, %53 : vector<8x8xi1>, vector<8x8xi32>
    %cst_17 = arith.constant dense<2147483647> : vector<8xi32>
    %55 = vector.multi_reduction <minsi>, %54, %cst_17 [0] : vector<8x8xi32> to vector<8xi32>
    %56 = vector.shape_cast %55 : vector<8xi32> to vector<1x8xi32>
    %57 = arith.cmpi eq, %56, %38 : vector<1x8xi32>
    %58 = arith.extui %57 : vector<1x8xi1> to vector<1x8xi32>
    %59 = arith.sitofp %58 : vector<1x8xi32> to vector<1x8xf32>
    %c0_18 = arith.constant 0 : index
    %c0_19 = arith.constant 0 : index
    %60 = vector.load %arg3[%c0_18, %c0_19] : memref<1x8xf32, #tpu.memory_space<vmem>>, vector<1x8xf32>
    tpu.vector_store %arg3[%c0_18, %c0_19], %59 {strides = array<i32>} : memref<1x8xf32, #tpu.memory_space<vmem>>, vector<1x8xf32>,
    return
  }
  func.func @transform_0(%arg0: i32) -> (i32, i32, i32) {
    %c0_i32 = arith.constant 0 : i32
    %c0_i32_0 = arith.constant 0 : i32
    %c0_i32_1 = arith.constant 0 : i32
    %c0_i32_2 = arith.constant 0 : i32
    return %c0_i32, %c0_i32_0, %c0_i32_1 : i32, i32, i32
  }
  func.func @transform_1(%arg0: i32) -> (i32, i32) {
    %c0_i32 = arith.constant 0 : i32
    %c0_i32_0 = arith.constant 0 : i32
    return %c0_i32, %arg0 : i32, i32
  }
  func.func @transform_2(%arg0: i32) -> (i32, i32) {
    %c0_i32 = arith.constant 0 : i32
    %c0_i32_0 = arith.constant 0 : i32
    return %c0_i32, %arg0 : i32, i32
  }
}

</mosaic_0001>

<bundles_post_ra>
// kernel: tpu_custom_call.1
= control target key start
LH: loop header
LB: loop body
LE: loop exit
PB: predicated region body
PF: predicated region fallthrough
CT: control target
= control target key end

     0   :  { %8 = vsyncpa [#allocation3], 0  ;;  %s538_s0 = inlined_call_operand.hbm [shape: f32[8,4,32], index: 0, kind: input, shape index: {}]   ;;  %s539_s1 = inlined_call_operand.hbm [shape: f32[1,8], index: 1, kind: output, shape index: {0}]   ;;  %s540_s2 = inlined_call_operand.hbm [shape: f32[1,8], index: 2, kind: output, shape index: {1}]  }
   0x1   :  { %9 = vsyncpa [#allocation4], 0 }
   0x2   :  { %10 = vsyncpa [#allocation7], 0  ;;  %s476_s9 = smov [#allocation2]  }
   0x3   :  { %s16_s10 = sshll.u32 %s476_s9, 4  ;;  %s17_s10 = int_to_ptr.vmem [resolvable:$true] %s16_s10 }
   0x4   :  { %s418_s11 = scalar_lea.vmem %s17_s10, 512  ;;  %p423_p1 = scmp.lt.s32.totalorder %s17_s10, %s17_s10 }
   0x5   :  { %p419_p0 = scmp.ne.s32.totalorder %s17_s10, %s418_s11  ;;  %p424_p2 = scmp.lt.s32.totalorder %s418_s11, %s418_s11 }
   0x7   :  { %p425_p3 = por %p424_p2, %p423_p1 }
   0x9   :  { %p426_p4 = pnand %p425_p3, %p419_p0 }
   0xb   :  { %429 = shalt.err (!%p426_p4)
}
   0xc   :  { %s477_s12 = smov 64   ;;  %s478_s13 = smov 4  }
   0xd   :  { %22 = dma.hbm_to_vmem [thread:$0]  %s538_s0, 512, %s17_s10, [#allocation3], %s477_s12, %s477_s12, %s478_s13  }
   0xe   :  { %470 = dma.done.wait [#allocation3], 512  }
   0xf   :  { %471 = vsyncadd [#allocation3], 4294966784  ;;  %v479_v0 = vmov 0.0   ;;  %vm480_vm0 = vmmov 0   ;;  %vm134_vm1 = vcmask 1042434   ;;  %vm137_vm2 = vcmask 1043459  }
  0x10   :  { %394 = vmatprep.subr.mxu0 %v479_v0  ;;  %396 = vmatprep.mubr.msk.f32.mxu0 %vm480_vm0, %v479_v0  ;;  %vm140_vm3 = vcmask 1044484   ;;  %vm143_vm4 = vcmask 1045509   ;;  %vm179_vm5 = vcmask 1041409   ;;  %v93_v1 = vld [vmem:[#allocation2] sm:$0xf]  ;;  %vm146_vm6 = vcmask 1046534  }
  0x11   :  { %v94_v2 = vld [vmem:[#allocation2 + $0x4] sm:$0xf]  ;;  %v95_v3 = vld [vmem:[#allocation2 + $0x8] sm:$0xf]  ;;  %v96_v4 = vld [vmem:[#allocation2 + $0xc] sm:$0xf] }
  0x12   :  { %v97_v5 = vld [vmem:[#allocation2 + $0x10] sm:$0xf]  ;;  %v98_v6 = vld [vmem:[#allocation2 + $0x14] sm:$0xf]  ;;  %vm149_vm7 = vcmask 1047559   ;;  %v162_v9 = vmul.f32 2.0, %v93_v1 }
  0x13   :  { %v99_v7 = vld [vmem:[#allocation2 + $0x18] sm:$0xf]  ;;  %v100_v8 = vld [vmem:[#allocation2 + $0x1c] sm:$0xf]  ;;  %v163_v10 = vmul.f32 2.0, %v94_v2  ;;  %vm215_vm8 = vcmask 261120  }
  0x14   :  { %v164_v11 = vmul.f32 2.0, %v95_v3  ;;  %v165_v12 = vmul.f32 2.0, %v96_v4  ;;  %v166_v13 = vmul.f32 2.0, %v97_v5  ;;  %v167_v14 = vmul.f32 2.0, %v98_v6  ;;  %v27_v15 = vld [vmem:[#allocation2] sm:$0xf] }
  0x15   :  { %v168_v16 = vmul.f32 2.0, %v99_v7  ;;  %v169_v17 = vmul.f32 2.0, %v100_v8  ;;  %v201_v18 = vrot.slane %v163_v10, 7  ;;  %v28_v19 = vld [vmem:[#allocation2 + $0x4] sm:$0xf]  ;;  %v43_v20 = vrot.slane %v27_v15, 1 }
  0x16   :  { %v203_v21 = vrot.slane %v164_v11, 6  ;;  %v205_v22 = vrot.slane %v165_v12, 5  ;;  %v207_v23 = vrot.slane %v166_v13, 4  ;;  %v209_v24 = vrot.slane %v167_v14, 3  ;;  %v29_v25 = vld [vmem:[#allocation2 + $0x8] sm:$0xf] }
  0x17   :  { %v202_v26 = vsel %vm179_vm5, %v201_v18, %v162_v9  ;;  %v211_v27 = vrot.slane %v168_v16, 2  ;;  %v213_v28 = vrot.slane %v169_v17, 1  ;;  %v30_v29 = vld [vmem:[#allocation2 + $0xc] sm:$0xf]  ;;  %v31_v30 = vld [vmem:[#allocation2 + $0x10] sm:$0xf]  ;;  %v59_v35 = vadd.f32 %v43_v20, %v27_v15 }
  0x18   :  { %v204_v31 = vsel %vm134_vm1, %v203_v21, %v202_v26  ;;  %v32_v32 = vld [vmem:[#allocation2 + $0x14] sm:$0xf]  ;;  %v33_v33 = vld [vmem:[#allocation2 + $0x18] sm:$0xf]  ;;  %v34_v34 = vld [vmem:[#allocation2 + $0x1c] sm:$0xf] }
  0x19   :  { %v206_v36 = vsel %vm137_vm2, %v205_v22, %v204_v31  ;;  %v44_v37 = vrot.slane %v28_v19, 1  ;;  %v45_v38 = vrot.slane %v29_v25, 1  ;;  %v46_v39 = vrot.slane %v30_v29, 1  ;;  %s481_s0 = smov [#allocation6]  }
  0x1a   :  { %v208_v40 = vsel %vm140_vm3, %v207_v23, %v206_v36  ;;  %v47_v41 = vrot.slane %v31_v30, 1  ;;  %v48_v42 = vrot.slane %v32_v32, 1  ;;  %v49_v43 = vrot.slane %v33_v33, 1  ;;  %s368_s16 = sshll.u32 %s481_s0, 4  ;;  %s369_s16 = int_to_ptr.vmem [resolvable:$true] %s368_s16 }
  0x1b   :  { %v210_v44 = vsel %vm143_vm4, %v209_v24, %v208_v40  ;;  %v50_v45 = vrot.slane %v34_v34, 1  ;;  %v60_v46 = vadd.f32 %v44_v37, %v28_v19  ;;  %v61_v47 = vadd.f32 %v45_v38, %v29_v25  ;;  %s430_s17 = scalar_lea.vmem %s369_s16, 16  ;;  %s434_s18 = scalar_lea.vmem %s369_s16, 32 }
  0x1c   :  { %v212_v48 = vsel %vm146_vm6, %v211_v27, %v210_v44  ;;  %v62_v49 = vadd.f32 %v46_v39, %v30_v29  ;;  %v63_v50 = vadd.f32 %v47_v41, %v31_v30  ;;  %v64_v51 = vadd.f32 %v48_v42, %v32_v32  ;;  %p431_p5 = scmp.ne.s32.totalorder %s369_s16, %s430_s17  ;;  %p435_p6 = scmp.lt.s32.totalorder %s369_s16, %s369_s16 }
  0x1d   :  { %v214_v52 = vsel %vm149_vm7, %v213_v28, %v212_v48  ;;  %v65_v53 = vadd.f32 %v49_v43, %v33_v33  ;;  %v66_v54 = vadd.f32 %v50_v45, %v34_v34  ;;  %v67_v55 = vrot.slane %v27_v15, 2  ;;  %p436_p7 = scmp.lt.s32.totalorder %s434_s18, %s430_s17 }
  0x1e   :  { %395 = vmatpush3.xpose.msk.msra.mxu0 %vm215_vm8, %v214_v52  ;;  %v68_v56 = vrot.slane %v28_v19, 2  ;;  %v69_v57 = vrot.slane %v29_v25, 2  ;;  %v70_v58 = vrot.slane %v30_v29, 2  ;;  %v71_v59 = vrot.slane %v31_v30, 2 }
  0x1f   :  { %v72_v60 = vrot.slane %v32_v32, 2  ;;  %v73_v61 = vrot.slane %v33_v33, 2  ;;  %v74_v62 = vrot.slane %v34_v34, 2  ;;  %v83_v63 = vadd.f32 %v67_v55, %v59_v35  ;;  %p437_p8 = por %p436_p7, %p435_p6 }
  0x20   :  { %v84_v1 = vadd.f32 %v68_v56, %v60_v46  ;;  %v85_v2 = vadd.f32 %v69_v57, %v61_v47  ;;  %v86_v3 = vadd.f32 %v70_v58, %v62_v49  ;;  %v87_v4 = vadd.f32 %v71_v59, %v63_v50 }
  0x21   :  { %v88_v5 = vadd.f32 %v72_v60, %v64_v51  ;;  %v89_v6 = vadd.f32 %v73_v61, %v65_v53  ;;  %v90_v7 = vadd.f32 %v74_v62, %v66_v54  ;;  %v101_v8 = vmul.f32 0.33333334, %v83_v63  ;;  %p438_p9 = pnand %p437_p8, %p431_p5 }
  0x22   :  { %v102_v9 = vmul.f32 0.33333334, %v84_v1  ;;  %v103_v10 = vmul.f32 0.33333334, %v85_v2  ;;  %v104_v11 = vmul.f32 0.33333334, %v86_v3 }
  0x23   :  { %v105_v12 = vmul.f32 0.33333334, %v87_v4  ;;  %v106_v13 = vmul.f32 0.33333334, %v88_v5  ;;  %v107_v14 = vmul.f32 0.33333334, %v89_v6 }
  0x24   :  { %v108_v15 = vmul.f32 0.33333334, %v90_v7  ;;  %v381_v16 = vadd.f32 -1e-06, %v101_v8  ;;  %v382_v17 = vadd.f32 -1e-06, %v102_v9 }
  0x25   :  { %v383_v18 = vadd.f32 -1e-06, %v103_v10  ;;  %v384_v19 = vadd.f32 -1e-06, %v104_v11  ;;  %v385_v20 = vadd.f32 -1e-06, %v105_v12  ;;  %v316_v12 = vlaneseq }
  0x26   :  { %v386_v21 = vadd.f32 -1e-06, %v106_v13  ;;  %v387_v22 = vadd.f32 -1e-06, %v107_v14  ;;  %v388_v23 = vadd.f32 -1e-06, %v108_v15  ;;  %v117_v24 = vmul.f32 %v381_v16, %v381_v16 }
  0x27   :  { %v178_v25 = vrot.slane %v381_v16, 1  ;;  %v181_v26 = vrot.slane %v383_v18, 7  ;;  %v183_v27 = vrot.slane %v384_v19, 6  ;;  %v185_v28 = vrot.slane %v385_v20, 5 }
  0x28   :  { %v187_v29 = vrot.slane %v386_v21, 4  ;;  %v189_v30 = vrot.slane %v387_v22, 3  ;;  %v191_v31 = vrot.slane %v388_v23, 2  ;;  %v118_v32 = vmul.f32 %v382_v17, %v382_v17 }
  0x29   :  { %v180_v33 = vsel %vm179_vm5, %v382_v17, %v178_v25  ;;  %v119_v34 = vmul.f32 %v383_v18, %v383_v18  ;;  %v120_v35 = vmul.f32 %v384_v19, %v384_v19  ;;  %v121_v36 = vmul.f32 %v385_v20, %v385_v20 }
  0x2a   :  { %v182_v37 = vsel %vm134_vm1, %v181_v26, %v180_v33  ;;  %v122_v38 = vmul.f32 %v386_v21, %v386_v21  ;;  %v123_v39 = vmul.f32 %v387_v22, %v387_v22  ;;  %v133_v40 = vrot.slane %v118_v32, 7 }
  0x2b   :  { %v184_v41 = vsel %vm137_vm2, %v183_v27, %v182_v37  ;;  %v136_v42 = vrot.slane %v119_v34, 6  ;;  %v139_v43 = vrot.slane %v120_v35, 5  ;;  %v142_v44 = vrot.slane %v121_v36, 4 }
  0x2c   :  { %v186_v45 = vsel %vm140_vm3, %v185_v28, %v184_v41  ;;  %v135_v46 = vsel %vm134_vm1, %v133_v40, %v117_v24  ;;  %v145_v47 = vrot.slane %v122_v38, 3  ;;  %v148_v50 = vrot.slane %v123_v39, 2 }
  0x2d   :  { %v188_v48 = vsel %vm143_vm4, %v187_v29, %v186_v45  ;;  %v138_v49 = vsel %vm137_vm2, %v136_v42, %v135_v46  ;;  %v124_v51 = vmul.f32 %v388_v23, %v388_v23  ;;  %vm154_vm9 = vcmask 261121  }
  0x2e   :  { %v190_v52 = vsel %vm146_vm6, %v189_v30, %v188_v48  ;;  %v141_v53 = vsel %vm140_vm3, %v139_v43, %v138_v49  ;;  %vm158_vm10 = vcmask 253952   ;;  %vm292_vm11 = vcmask 1046528  }
  0x2f   :  { %v192_v54 = vsel %vm149_vm7, %v191_v31, %v190_v52  ;;  %v144_v55 = vsel %vm143_vm4, %v142_v44, %v141_v53  ;;  %v151_v57 = vrot.slane %v124_v51, 1  ;;  %vm298_vm12 = vcmask 64512  }
  0x30   :  { %397 = vmatmul.mubr.msk.f32.vlgmr.msra.gmra.mxu0 %vm215_vm8, %v192_v54  ;;  %v147_v56 = vsel %vm146_vm6, %v145_v47, %v144_v55  ;;  %v317_v15 = vshrl.u32 %v316_v12, 7  ;;  %v319_v22 = vand.u32 127, %v316_v12  ;;  %vm334_vm2 = vcmask 57344  }
  0x31   :  { %v150_v58 = vsel %vm149_vm7, %v148_v50, %v147_v56  ;;  %v159_v60 = vsel %vm158_vm10, %v151_v57, 0.0 }
  0x32   :  { %v155_v59 = vsel %vm154_vm9, %v150_v58, 0.0  ;;  %vm322_vm1 = vcmp.eq.s32.totalorder %v317_v15, %v319_v22 }
  0x33   :  { %156 = vadd.xlane.f32.xlu0 %v155_v59 }
  0x37   :  { %160 = vadd.xlane.f32.xlu0 %v159_v60 }
  0xbc   :  { %v157_v61 = vpop.xlane.xlu0 %156 }
  0xbd   :  { %v293_v63 = vrot.slane %v157_v61, 1 }
  0xc0   :  { %v161_v62 = vpop.xlane.xlu0 %160 }
  0xc1   :  { %v294_v1 = vrot.slane %v161_v62, 1 }
  0xc3   :  { %v295_v3 = vsel %vm292_vm11, %v293_v63, %v294_v1 }
  0xf0   :  { %v286_v2 = vpop.f32.mrf.mxu0 }
  0xf1   :  { %v297_v4 = vsub.f32 %v286_v2, %v295_v3 }
  0xf2   :  { %v398_v5 = vpop.f32.mrf.mxu0 }
  0xf3   :  { %v299_v6 = vsel %vm298_vm12, %v297_v4, -inf }
  0xf4   :  { %v300_v7 = vrot.slane %v299_v6, 4 }
  0xf6   :  { %v301_v8 = vmax.f32 %v299_v6, %v300_v7 }
  0xf8   :  { %v302_v9 = vrot.slane %v301_v8, 2 }
  0xfa   :  { %v303_v10 = vmax.f32 %v301_v8, %v302_v9 }
  0xfc   :  { %v304_v11 = vrot.slane %v303_v10, 1 }
  0xfe   :  { %v305_v13 = vmax.f32 %v303_v10, %v304_v11 }
 0x100   :  { %v306_v14 = vsub.f32 %v297_v4, %v305_v13 }
 0x102   :  { %v307_v16 = vmul.f32 1.442695, %v306_v14  ;;  %vm336_vm13 = vcmp.ge.f32.partialorder %v306_v14, 0.0  ;;  %v323_v30 = vsel %vm322_vm1, %v306_v14, 0.0 }
 0x103   :  { %v337_v17 = vsel %vm336_vm13, %v317_v15, 8 }
 0x104   :  { %406 = vpow2.f32 %v307_v16  ;;  %v338_v18 = vsel %vm298_vm12, %v337_v17, 2147483647 }
 0x105   :  { %v339_v19 = vrot.slane %v338_v18, 4 }
 0x107   :  { %vm340_vm14 = vcmp.lt.s32.totalorder %v338_v18, %v339_v19 }
 0x108   :  { %v341_v20 = vsel %vm340_vm14, %v338_v18, %v339_v19 }
 0x109   :  { %v342_v21 = vrot.slane %v341_v20, 2 }
 0x10b   :  { %vm343_vm15 = vcmp.lt.s32.totalorder %v341_v20, %v342_v21 }
 0x10c   :  { %v344_v23 = vsel %vm343_vm15, %v341_v20, %v342_v21 }
 0x10d   :  { %v345_v24 = vrot.slane %v344_v23, 1 }
 0x10f   :  { %vm346_vm0 = vcmp.lt.s32.totalorder %v344_v23, %v345_v24 }
 0x110   :  { %v347_v25 = vsel %vm346_vm0, %v344_v23, %v345_v24 }
 0x111   :  { %v407_v26 = vpop.eup %406  ;;  %vm348_vm3 = vcmp.eq.s32.totalorder %v347_v25, %v319_v22 }
 0x112   :  { %v309_v27 = vsel %vm298_vm12, %v407_v26, 0.0  ;;  %v391_v28 = vsel %vm348_vm3, 1.0, %v479_v0 }
 0x113   :  { %v310_v29 = vrot.slane %v309_v27, 4  ;;  %351 = vst.msk [vmem:[#allocation6] sm:$0x1] %vm334_vm2, %v391_v28 }
 0x114   :  { %441 = shalt.err (!%p438_p9)
}
 0x115   :  { %371 = dma.vmem_to_hbm [thread:$0]  %s369_s16, 16, %s540_s2, [#allocation7]   ;;  %v311_v31 = vadd.f32 %v310_v29, %v309_v27  ;;  %v324_v32 = vsel %vm298_vm12, %v323_v30, 0.0 }
 0x116   :  { %v325_v34 = vrot.slane %v324_v32, 4  ;;  %s482_s21 = smov [#allocation5]  }
 0x117   :  { %v312_v0 = vrot.slane %v311_v31, 2  ;;  %s358_s22 = sshll.u32 %s482_s21, 4  ;;  %s359_s22 = int_to_ptr.vmem [resolvable:$true] %s358_s22 }
 0x118   :  { %v326_v36 = vadd.f32 %v325_v34, %v324_v32  ;;  %s450_s2 = scalar_lea.vmem %s359_s22, 16  ;;  %s454_s23 = scalar_lea.vmem %s359_s22, 32 }
 0x119   :  { %v313_v33 = vadd.f32 %v312_v0, %v311_v31  ;;  %p451_p10 = scmp.ne.s32.totalorder %s359_s22, %s450_s2  ;;  %p455_p11 = scmp.lt.s32.totalorder %s359_s22, %s359_s22 }
 0x11a   :  { %v327_v38 = vrot.slane %v326_v36, 2  ;;  %p456_p12 = scmp.lt.s32.totalorder %s454_s23, %s450_s2 }
 0x11b   :  { %v314_v35 = vrot.slane %v313_v33, 1 }
 0x11c   :  { %v328_v39 = vadd.f32 %v327_v38, %v326_v36  ;;  %p457_p13 = por %p456_p12, %p455_p11 }
 0x11d   :  { %v315_v37 = vadd.f32 %v314_v35, %v313_v33 }
 0x11e   :  { %v329_v40 = vrot.slane %v328_v39, 1  ;;  %p458_p0 = pnand %p457_p13, %p451_p10 }
 0x11f   :  { %408 = vlog2.f32 %v315_v37 }
 0x120   :  { %v330_v42 = vadd.f32 %v329_v40, %v328_v39 }
 0x12c   :  { %v409_v41 = vpop.eup %408 }
 0x12d   :  { %v332_v43 = vmul.f32 0.6931472, %v409_v41 }
 0x12f   :  { %v333_v44 = vsub.f32 %v332_v43, %v330_v42 }
 0x131   :  { %335 = vst.msk [vmem:[#allocation5] sm:$0x1] %vm334_vm2, %v333_v44 }
 0x132   :  { %461 = shalt.err (!%p458_p0)
}
 0x133   :  { %361 = dma.vmem_to_hbm [thread:$0]  %s359_s22, 16, %s539_s1, [#allocation4]  }
 0x134   :  { %472 = dma.done.wait [#allocation4], 16  }
 0x135   :  { %473 = vsyncadd [#allocation4], 4294967280 }
 0x136   :  { %474 = dma.done.wait [#allocation7], 16  }
 0x137   :  { %475 = vsyncadd [#allocation7], 4294967280 }
 0x138   :  { %378 = vsyncpa [#allocation3], 1 }
 0x139   :  { %379 = vsyncpa [#allocation4], 1 }
 0x13a   :  { %380 = vsyncpa [#allocation7], 1 }

</bundles_post_ra>
